<compile_context>
chip_gen: v5e
topology: v5e:2x2
jax: 0.10.0
libtpu: 0.0.40
codegen_flags: <defaults>
</compile_context>

<pallas_src>
import jax
import jax.numpy as jnp
from jax.experimental import pallas as pl
from jax.experimental.pallas import tpu as pltpu

_LANES = 128


def _cdiv(a, b):
    return -(-a // b)


def _round_up(a, b):
    return _cdiv(a, b) * b


def _bbce_partial_kernel(pred_ref, gt_ref, out_ref):
    """Accumulates (S_pos, S_a, S_b) as (8, 128) vector partial sums.

    Grid = (splits, steps). The output block index depends only on the split
    axis, so out_ref stays VMEM-resident across the reduction axis and acts as
    the accumulator (initialized at step 0 via pl.when).
    """
    step = pl.program_id(1)

    @pl.when(step == 0)
    def _init():
        out_ref[...] = jnp.zeros_like(out_ref)

    x = pred_ref[...].astype(jnp.float32)
    y = gt_ref[...].astype(jnp.float32)

    # Numerically stable softplus(-x) = max(-x, 0) + log1p(exp(-|x|)).
    # One exp + one log1p per element on the EUP slot (free vs the VPU work).
    sp = jnp.maximum(-x, 0.0) + jnp.log1p(jnp.exp(-jnp.abs(x)))

    a = (1.0 - y) * x + sp      # pos_weight-independent BCE part
    b = y * sp                  # gets scaled by (ratio - 1) in the epilogue

    rows, lanes = x.shape
    groups = rows // 8
    # Fold the row (sublane-major) axis with VPU adds only; the reshape
    # (block_rows, 128) -> (groups, 8, 128) is layout-preserving (vreg tiles),
    # so no XLU / relayout traffic inside the hot loop.
    out_ref[0, 0, :, :] += jnp.sum(y.reshape(groups, 8, lanes), axis=0)
    out_ref[0, 1, :, :] += jnp.sum(a.reshape(groups, 8, lanes), axis=0)
    out_ref[0, 2, :, :] += jnp.sum(b.reshape(groups, 8, lanes), axis=0)


def bbce_with_logit_loss(pred, gt, *, block_rows=2048, max_splits=2):
    """Balanced BCE-with-logits loss (mean reduction), matching the PyTorch module."""
    assert pred.shape == gt.shape, "pred and gt must have the same shape"
    n = pred.size
    assert n > 0

    # Lane-dense (rows, 128) layout with sublane-aligned blocks.
    rows_needed = _cdiv(n, _LANES)
    block_rows = min(block_rows, _round_up(rows_needed, 8))
    block_rows = max(8, (block_rows // 8) * 8)

    num_blocks = _cdiv(rows_needed, block_rows)
    splits = max_splits if num_blocks >= max_splits else 1
    steps = _cdiv(num_blocks, splits)
    rows_padded = splits * steps * block_rows
    n_padded = rows_padded * _LANES
    n_pad = n_padded - n

    p_flat = pred.reshape(-1)
    g_flat = gt.reshape(-1)
    if n_pad:
        # Padded elements use x = 0, y = 0: they add exactly softplus(0) = ln 2
        # to S_a (corrected analytically below) and nothing to S_pos / S_b.
        # Typical segmentation shapes (H*W multiple of 128) take the no-pad,
        # zero-copy path.
        p_flat = jnp.pad(p_flat, (0, n_pad))
        g_flat = jnp.pad(g_flat, (0, n_pad))
    p2 = p_flat.reshape(rows_padded, _LANES)
    g2 = g_flat.reshape(rows_padded, _LANES)

    in_map = lambda c, i: (c * steps + i, 0)
    out = pl.pallas_call(
        _bbce_partial_kernel,
        out_shape=jax.ShapeDtypeStruct((splits, 3, 8, _LANES), jnp.float32),
        grid_spec=pltpu.PrefetchScalarGridSpec(
            num_scalar_prefetch=0,
            grid=(splits, steps),
            in_specs=[
                pl.BlockSpec((block_rows, _LANES), in_map),
                pl.BlockSpec((block_rows, _LANES), in_map),
            ],
            out_specs=pl.BlockSpec((1, 3, 8, _LANES), lambda c, i: (c, 0, 0, 0)),
        ),
        compiler_params=pltpu.CompilerParams(
            dimension_semantics=("parallel", "arbitrary")),
    )(p2, g2)

    # Scalar epilogue (one XLU reduction over a tiny array + a few scalar ops).
    partial = jnp.sum(out, axis=(0, 2, 3))          # (3,)
    s_pos = partial[0]
    s_a = partial[1]
    s_b = partial[2]
    if n_pad:
        # softplus(0) computed in-kernel is exactly log1p(1) in f32.
        s_a = s_a - jnp.float32(n_pad) * jnp.log1p(jnp.float32(1.0))

    n_f = jnp.float32(n)
    eps = jnp.float32(1e-10)
    count_pos = s_pos + eps
    count_neg = n_f - s_pos                          # = sum(1 - gt), N is static
    ratio = count_neg / count_pos
    w_neg = count_pos / (count_pos + count_neg)
    loss = w_neg * (s_a + (ratio - 1.0) * s_b) / n_f
    return loss


def _reference(pred, gt):
    # Pure-JAX reference mirroring the PyTorch module (sanity checking only).
    eps = 1e-10
    count_pos = jnp.sum(gt) + eps
    count_neg = jnp.sum(1.0 - gt)
    ratio = count_neg / count_pos
    w_neg = count_pos / (count_pos + count_neg)
    x, y = pred, gt
    max_val = jnp.maximum(-x, 0.0)
    sp = jnp.log(jnp.exp(-max_val) + jnp.exp(-x - max_val)) + max_val
    per = (1.0 - y) * x + (1.0 + (ratio - 1.0) * y) * sp
    return w_neg * jnp.mean(per)


if __name__ == "__main__":
    key = jax.random.PRNGKey(0)
    k1, k2, k3, k4, k5, k6 = jax.random.split(key, 6)

    loss_fn = jax.jit(bbce_with_logit_loss,
                      static_argnames=("block_rows", "max_splits"))

    # 1) Standard small NCHW input, default tiling (single block).
    B, C, H, W = 2, 4, 16, 16
    pred = jax.random.normal(k1, (B, C, H, W), dtype=jnp.float32)            # logits
    gt = (jax.random.uniform(k2, (B, C, H, W)) > 0.5).astype(jnp.float32)    # binary mask
    loss = jax.block_until_ready(loss_fn(pred, gt))
    ref = _reference(pred, gt)
    assert jnp.allclose(loss, ref, rtol=2e-5, atol=1e-6), (loss, ref)

    # 2) Small blocks -> exercises the 2-way parallel split AND multi-step
    #    accumulation across the reduction ("arbitrary") axis.
    pred2 = jax.random.normal(k3, (2, 4, 32, 16), dtype=jnp.float32)
    gt2 = (jax.random.uniform(k4, (2, 4, 32, 16)) > 0.5).astype(jnp.float32)
    ref2 = _reference(pred2, gt2)
    loss2 = jax.block_until_ready(loss_fn(pred2, gt2, block_rows=8))
    assert jnp.allclose(loss2, ref2, rtol=2e-5, atol=1e-6), (loss2, ref2)

    # 3) Element count not a multiple of 128 -> zero-padding + analytic ln(2)
    #    correction + true-N mean.
    pred3 = jax.random.normal(k5, (2, 3, 7, 11), dtype=jnp.float32)
    gt3 = (jax.random.uniform(k6, (2, 3, 7, 11)) > 0.5).astype(jnp.float32)
    ref3 = _reference(pred3, gt3)
    loss3 = jax.block_until_ready(loss_fn(pred3, gt3))
    assert jnp.allclose(loss3, ref3, rtol=2e-5, atol=1e-6), (loss3, ref3)

    print("KERNEL_OK")
</pallas_src>

<mosaic_0001>
module attributes {stable_mosaic.version = 11 : i64} {
  func.func @_bbce_partial_kernel(%arg0: i32, %arg1: i32, %arg2: memref<16x128xf32, #tpu.memory_space<vmem>>, %arg3: memref<16x128xf32, #tpu.memory_space<vmem>>, %arg4: memref<1x3x8x128xf32, #tpu.memory_space<vmem>>) attributes {dimension_semantics = [#tpu.dimension_semantics<parallel>, #tpu.dimension_semantics<arbitrary>], iteration_bounds = array<i64: 1, 1>, scalar_prefetch = 0 : i64, scratch_operands = 0 : i64, tpu.core_type = #tpu.core_type<tc>, window_params = [{transform_indices = @transform_0, window_bounds = array<i64: 16, 128>}, {transform_indices = @transform_1, window_bounds = array<i64: 16, 128>}, {transform_indices = @transform_2, window_bounds = array<i64: 1, 3, 8, 128>}]} {
    %c0_i32 = arith.constant 0 : i32
    %0 = arith.cmpi eq, %arg1, %c0_i32 : i32
    %1 = arith.extui %0 : i1 to i32
    %c0_i32_0 = arith.constant 0 : i32
    %2 = arith.cmpi ne, %1, %c0_i32_0 : i32
    scf.if %2 {
      %cst_32 = arith.constant 0.000000e+00 : f32
      %44 = vector.broadcast %cst_32 : f32 to vector<1x3x8x128xf32>
      %c0_33 = arith.constant 0 : index
      %c0_34 = arith.constant 0 : index
      %c0_35 = arith.constant 0 : index
      %c0_36 = arith.constant 0 : index
      %45 = vector.load %arg4[%c0_33, %c0_34, %c0_35, %c0_36] : memref<1x3x8x128xf32, #tpu.memory_space<vmem>>, vector<1x3x8x128xf32>
      tpu.vector_store %arg4[%c0_33, %c0_34, %c0_35, %c0_36], %44 {strides = array<i32>} : memref<1x3x8x128xf32, #tpu.memory_space<vmem>>, vector<1x3x8x128xf32>,
    } else {
    }
    %c0 = arith.constant 0 : index
    %c0_1 = arith.constant 0 : index
    %3 = vector.load %arg2[%c0, %c0_1] : memref<16x128xf32, #tpu.memory_space<vmem>>, vector<16x128xf32>
    %c0_2 = arith.constant 0 : index
    %c0_3 = arith.constant 0 : index
    %4 = vector.load %arg3[%c0_2, %c0_3] : memref<16x128xf32, #tpu.memory_space<vmem>>, vector<16x128xf32>
    %cst = arith.constant 0.000000e+00 : f32
    %5 = vector.broadcast %cst : f32 to vector<16x128xf32>
    %6 = arith.subf %5, %3 : vector<16x128xf32>
    %cst_4 = arith.constant 0.000000e+00 : f32
    %7 = vector.broadcast %cst_4 : f32 to vector<16x128xf32>
    %8 = arith.maximumf %6, %7 : vector<16x128xf32>
    %9 = math.absf %3 : vector<16x128xf32>
    %cst_5 = arith.constant 0.000000e+00 : f32
    %10 = vector.broadcast %cst_5 : f32 to vector<16x128xf32>
    %11 = arith.subf %10, %9 : vector<16x128xf32>
    %12 = math.exp %11 : vector<16x128xf32>
    %13 = math.log1p %12 : vector<16x128xf32>
    %14 = arith.addf %8, %13 : vector<16x128xf32>
    %cst_6 = arith.constant 1.000000e+00 : f32
    %15 = vector.broadcast %cst_6 : f32 to vector<16x128xf32>
    %16 = arith.subf %15, %4 : vector<16x128xf32>
    %17 = arith.mulf %16, %3 : vector<16x128xf32>
    %18 = arith.addf %17, %14 : vector<16x128xf32>
    %19 = arith.mulf %4, %14 : vector<16x128xf32>
    %c0_7 = arith.constant 0 : index
    %c0_8 = arith.constant 0 : index
    %c0_9 = arith.constant 0 : index
    %c0_10 = arith.constant 0 : index
    %20 = vector.load %arg4[%c0_7, %c0_8, %c0_9, %c0_10] : memref<1x3x8x128xf32, #tpu.memory_space<vmem>>, vector<1x1x8x128xf32>
    %21 = vector.shape_cast %20 : vector<1x1x8x128xf32> to vector<8x128xf32>
    %22 = vector.shape_cast %4 : vector<16x128xf32> to vector<2x8x128xf32>
    %cst_11 = arith.constant dense<0.000000e+00> : vector<8x128xf32>
    %23 = vector.multi_reduction <add>, %22, %cst_11 [0] : vector<2x8x128xf32> to vector<8x128xf32>
    %24 = arith.addf %21, %23 : vector<8x128xf32>
    %c0_12 = arith.constant 0 : index
    %c0_13 = arith.constant 0 : index
    %c0_14 = arith.constant 0 : index
    %c0_15 = arith.constant 0 : index
    %25 = vector.load %arg4[%c0_12, %c0_13, %c0_14, %c0_15] : memref<1x3x8x128xf32, #tpu.memory_space<vmem>>, vector<1x1x8x128xf32>
    %26 = vector.shape_cast %25 : vector<1x1x8x128xf32> to vector<8x128xf32>
    %27 = vector.shape_cast %24 : vector<8x128xf32> to vector<1x1x8x128xf32>
    tpu.vector_store %arg4[%c0_12, %c0_13, %c0_14, %c0_15], %27 {strides = array<i32>} : memref<1x3x8x128xf32, #tpu.memory_space<vmem>>, vector<1x1x8x128xf32>,
    %c0_16 = arith.constant 0 : index
    %c1 = arith.constant 1 : index
    %c0_17 = arith.constant 0 : index
    %c0_18 = arith.constant 0 : index
    %28 = vector.load %arg4[%c0_16, %c1, %c0_17, %c0_18] : memref<1x3x8x128xf32, #tpu.memory_space<vmem>>, vector<1x1x8x128xf32>
    %29 = vector.shape_cast %28 : vector<1x1x8x128xf32> to vector<8x128xf32>
    %30 = vector.shape_cast %18 : vector<16x128xf32> to vector<2x8x128xf32>
    %cst_19 = arith.constant dense<0.000000e+00> : vector<8x128xf32>
    %31 = vector.multi_reduction <add>, %30, %cst_19 [0] : vector<2x8x128xf32> to vector<8x128xf32>
    %32 = arith.addf %29, %31 : vector<8x128xf32>
    %c0_20 = arith.constant 0 : index
    %c1_21 = arith.constant 1 : index
    %c0_22 = arith.constant 0 : index
    %c0_23 = arith.constant 0 : index
    %33 = vector.load %arg4[%c0_20, %c1_21, %c0_22, %c0_23] : memref<1x3x8x128xf32, #tpu.memory_space<vmem>>, vector<1x1x8x128xf32>
    %34 = vector.shape_cast %33 : vector<1x1x8x128xf32> to vector<8x128xf32>
    %35 = vector.shape_cast %32 : vector<8x128xf32> to vector<1x1x8x128xf32>
    tpu.vector_store %arg4[%c0_20, %c1_21, %c0_22, %c0_23], %35 {strides = array<i32>} : memref<1x3x8x128xf32, #tpu.memory_space<vmem>>, vector<1x1x8x128xf32>,
    %c0_24 = arith.constant 0 : index
    %c2 = arith.constant 2 : index
    %c0_25 = arith.constant 0 : index
    %c0_26 = arith.constant 0 : index
    %36 = vector.load %arg4[%c0_24, %c2, %c0_25, %c0_26] : memref<1x3x8x128xf32, #tpu.memory_space<vmem>>, vector<1x1x8x128xf32>
    %37 = vector.shape_cast %36 : vector<1x1x8x128xf32> to vector<8x128xf32>
    %38 = vector.shape_cast %19 : vector<16x128xf32> to vector<2x8x128xf32>
    %cst_27 = arith.constant dense<0.000000e+00> : vector<8x128xf32>
    %39 = vector.multi_reduction <add>, %38, %cst_27 [0] : vector<2x8x128xf32> to vector<8x128xf32>
    %40 = arith.addf %37, %39 : vector<8x128xf32>
    %c0_28 = arith.constant 0 : index
    %c2_29 = arith.constant 2 : index
    %c0_30 = arith.constant 0 : index
    %c0_31 = arith.constant 0 : index
    %41 = vector.load %arg4[%c0_28, %c2_29, %c0_30, %c0_31] : memref<1x3x8x128xf32, #tpu.memory_space<vmem>>, vector<1x1x8x128xf32>
    %42 = vector.shape_cast %41 : vector<1x1x8x128xf32> to vector<8x128xf32>
    %43 = vector.shape_cast %40 : vector<8x128xf32> to vector<1x1x8x128xf32>
    tpu.vector_store %arg4[%c0_28, %c2_29, %c0_30, %c0_31], %43 {strides = array<i32>} : memref<1x3x8x128xf32, #tpu.memory_space<vmem>>, vector<1x1x8x128xf32>,
    return
  }
  func.func @transform_0(%arg0: i32, %arg1: i32) -> (i32, i32) {
    %c1_i32 = arith.constant 1 : i32
    %0 = arith.muli %arg0, %c1_i32 : i32
    %1 = arith.addi %0, %arg1 : i32
    %c0_i32 = arith.constant 0 : i32
    %c0_i32_0 = arith.constant 0 : i32
    return %1, %c0_i32 : i32, i32
  }
  func.func @transform_1(%arg0: i32, %arg1: i32) -> (i32, i32) {
    %c1_i32 = arith.constant 1 : i32
    %0 = arith.muli %arg0, %c1_i32 : i32
    %1 = arith.addi %0, %arg1 : i32
    %c0_i32 = arith.constant 0 : i32
    %c0_i32_0 = arith.constant 0 : i32
    return %1, %c0_i32 : i32, i32
  }
  func.func @transform_2(%arg0: i32, %arg1: i32) -> (i32, i32, i32, i32) {
    %c0_i32 = arith.constant 0 : i32
    %c0_i32_0 = arith.constant 0 : i32
    %c0_i32_1 = arith.constant 0 : i32
    %c0_i32_2 = arith.constant 0 : i32
    return %arg0, %c0_i32, %c0_i32_0, %c0_i32_1 : i32, i32, i32, i32
  }
}

</mosaic_0001>

<bundles_post_ra>
// kernel: bbce_with_logit_loss.1
= control target key start
LH: loop header
LB: loop body
LE: loop exit
PB: predicated region body
PF: predicated region fallthrough
CT: control target
= control target key end

     0   :  { %s185_s1 = inlined_call_operand.vmem [shape: f32[16,128], index: 1, kind: input, shape index: {}]   ;;  %s186_s0 = inlined_call_operand.vmem [shape: f32[16,128], index: 0, kind: input, shape index: {}]   ;;  %s187_s2 = inlined_call_operand.vmem [shape: f32[1,3,8,128], index: 2, kind: output, shape index: {}]  }
   0x1   :  { %v64_v0 = vld [vmem:[%s185_s1] sm:$0xff]  ;;  %v65_v1 = vld [vmem:[%s185_s1 + $0x8] sm:$0xff] }
   0x2   :  { %v62_v2 = vld [vmem:[%s186_s0] sm:$0xff]  ;;  %v107_v3 = vadd.f32 %v65_v1, %v64_v0  ;;  %v63_v4 = vld [vmem:[%s186_s0 + $0x8] sm:$0xff]  ;;  %v98_v23 = vsub.f32 1.0, %v64_v0  ;;  %v99_v24 = vsub.f32 1.0, %v65_v1 }
   0x3   :  { %v70_v5 = vand.u32 2147483647, %v62_v2  ;;  %v71_v6 = vand.u32 2147483647, %v63_v4  ;;  %v66_v18 = vsub.f32 0.0, %v62_v2  ;;  %v67_v21 = vsub.f32 0.0, %v63_v4 }
   0x4   :  { %109 = vst [vmem:[%s187_s2] sm:$0xff] %v107_v3  ;;  %v100_v33 = vmul.f32 %v98_v23, %v62_v2  ;;  %v101_v35 = vmul.f32 %v99_v24, %v63_v4 }
   0x5   :  { %v72_v7 = vsub.f32 0.0, %v70_v5  ;;  %v73_v8 = vsub.f32 0.0, %v71_v6  ;;  %v68_v27 = vmax.f32 %v66_v18, 0.0  ;;  %v69_v30 = vmax.f32 %v67_v21, 0.0 }
   0x7   :  { %v74_v9 = vmul.f32 1.442695, %v72_v7  ;;  %v76_v10 = vmul.f32 1.442695, %v73_v8 }
   0x9   :  { %141 = vpow2.f32 %v74_v9 }
   0xa   :  { %143 = vpow2.f32 %v76_v10 }
   0xf   :  { %v142_v11 = vpop.eup %141 }
  0x10   :  { %v144_v12 = vpop.eup %143  ;;  %v78_v13 = vadd.f32 1.0, %v142_v11  ;;  %v81_v14 = vmul.f32 -0.5, %v142_v11  ;;  %v84_v19 = vand.u32 2147483647, %v142_v11 }
  0x11   :  { %v87_v15 = vadd.f32 1.0, %v144_v12  ;;  %v90_v16 = vmul.f32 -0.5, %v144_v12  ;;  %v93_v22 = vand.u32 2147483647, %v144_v12 }
  0x12   :  { %145 = vlog2.f32 %v78_v13  ;;  %v82_v17 = vadd.f32 1.0, %v81_v14  ;;  %vm85_vm0 = vcmp.lt.f32.partialorder %v84_v19, 0.0004427343 }
  0x13   :  { %147 = vlog2.f32 %v87_v15  ;;  %v91_v20 = vadd.f32 1.0, %v90_v16  ;;  %vm94_vm1 = vcmp.lt.f32.partialorder %v93_v22, 0.0004427343 }
  0x14   :  { %v83_v25 = vmul.f32 %v142_v11, %v82_v17 }
  0x15   :  { %v92_v28 = vmul.f32 %v144_v12, %v91_v20 }
  0x18   :  { %v146_v26 = vpop.eup %145 }
  0x19   :  { %v148_v29 = vpop.eup %147  ;;  %v80_v31 = vmul.f32 0.6931472, %v146_v26 }
  0x1a   :  { %v89_v32 = vmul.f32 0.6931472, %v148_v29 }
  0x1b   :  { %v86_v34 = vsel %vm85_vm0, %v83_v25, %v80_v31 }
  0x1c   :  { %v95_v36 = vsel %vm94_vm1, %v92_v28, %v89_v32  ;;  %v96_v37 = vadd.f32 %v86_v34, %v68_v27 }
  0x1d   :  { %v97_v38 = vadd.f32 %v95_v36, %v69_v30 }
  0x1e   :  { %v102_v39 = vadd.f32 %v100_v33, %v96_v37  ;;  %v104_v40 = vmul.f32 %v96_v37, %v64_v0 }
  0x1f   :  { %v103_v41 = vadd.f32 %v101_v35, %v97_v38  ;;  %v105_v42 = vmul.f32 %v97_v38, %v65_v1 }
  0x21   :  { %v112_v43 = vadd.f32 %v103_v41, %v102_v39  ;;  %v117_v44 = vadd.f32 %v105_v42, %v104_v40 }
  0x23   :  { %137 = vst [vmem:[%s187_s2 + $0x8] sm:$0xff] %v112_v43 }
  0x24   :  { %139 = vst [vmem:[%s187_s2 + $0x10] sm:$0xff] %v117_v44 }

</bundles_post_ra>
